<compile_context>
chip_gen: v5e
topology: v5e:2x2
jax: 0.10.0
libtpu: 0.0.40
codegen_flags: <defaults>
</compile_context>

<pallas_src>
import functools

import jax
import jax.numpy as jnp
from jax.experimental import pallas as pl
from jax.experimental.pallas import tpu as pltpu


_VMEM_LIMIT_BYTES = 64 * 1024 * 1024      # safe on v5e/v6e (128 MiB) and v7x (64 MiB)
_VMEM_WORKING_BUDGET = 40 * 1024 * 1024   # target working set (leaves headroom)


def _round_up(a: int, b: int) -> int:
    return (a + b - 1) // b * b


def _cdiv(a: int, b: int) -> int:
    return -(-a // b)


def encoder_kernel(x_ref, w1_ref, w2_ref, p_ref, out_ref, *, d_valid: int):
    """One row tile: Linear1 -> ReLU -> Linear2 -> LayerNorm -> +residual.

    Refs are lane-padded to Dp (multiple of 128).  Padded columns of the
    weights / biases are zero, so padded lanes of the lin_block output are
    exactly zero and only the LayerNorm statistics need masking (and only
    when d_valid < Dp).
    """
    x = x_ref[...]                                   # (tm, Dp), input dtype

    b1 = p_ref[0:1, :]                               # (1, Dp) f32
    b2 = p_ref[1:2, :]
    gamma = p_ref[2:3, :]
    beta = p_ref[3:4, :]

    # lin_block: Linear1 -> ReLU -> Linear2.  bf16 operands on the MXU,
    # f32 accumulation; bias adds in f32.
    xb = x.astype(jnp.bfloat16)
    h = jnp.dot(xb, w1_ref[...], preferred_element_type=jnp.float32) + b1
    h = jnp.maximum(h, 0.0)
    o = jnp.dot(h.astype(jnp.bfloat16), w2_ref[...],
                preferred_element_type=jnp.float32) + b2

    # LayerNorm over the valid (un-padded) d_valid lanes (torch eps = 1e-5).
    dp = o.shape[-1]
    inv_d = 1.0 / float(d_valid)
    mean = jnp.sum(o, axis=-1, keepdims=True) * inv_d   # padded lanes of o are 0
    if d_valid == dp:
        cent = o - mean                                  # no mask needed
    else:
        lane = jax.lax.broadcasted_iota(jnp.int32, o.shape, dimension=1)
        cent = jnp.where(lane < d_valid, o - mean, 0.0)
    var = jnp.sum(cent * cent, axis=-1, keepdims=True) * inv_d
    inv = jax.lax.rsqrt(var + 1e-5)
    ln = cent * inv * gamma + beta                       # padded lanes stay 0

    # Residual add (graph layers are identity here, so x_residual == x).
    out_ref[...] = (ln + x.astype(jnp.float32)).astype(out_ref.dtype)


def prepare_params(params):
    """Pad / transpose / cast the parameters ONCE (hoisted out of the fwd path)."""
    D = params["w1"].shape[0]
    Dp = _round_up(max(D, 128), 128)
    w1_t = jnp.zeros((Dp, Dp), jnp.bfloat16).at[:D, :D].set(
        params["w1"].T.astype(jnp.bfloat16))
    w2_t = jnp.zeros((Dp, Dp), jnp.bfloat16).at[:D, :D].set(
        params["w2"].T.astype(jnp.bfloat16))
    pvec = jnp.zeros((4, Dp), jnp.float32).at[:, :D].set(
        jnp.stack([params["b1"], params["b2"],
                   params["gamma"], params["beta"]]).astype(jnp.float32))
    return {"w1_t": w1_t, "w2_t": w2_t, "pvec": pvec, "d": D, "dp": Dp}


def _row_tiling(n: int, dp: int, x_itemsize: int, tile_m: int):
    """Pick a VMEM-budgeted, balanced row tiling (tm multiple of 8)."""
    # Single-buffered bf16 weights + f32 param slab.
    const_bytes = 2 * dp * dp * 2 + 4 * dp * 4
    # Per-row bytes: x + out double-buffered, plus ~3 f32 intermediates (h, o, ln).
    per_row = dp * (2 * x_itemsize + 2 * x_itemsize + 3 * 4)
    budget = _VMEM_WORKING_BUDGET - const_bytes
    tm_budget = max(8, budget // per_row) if budget > per_row * 8 else 8
    tm_cap = max(8, min(int(tile_m), int(tm_budget), _round_up(n, 8)))
    grid = _cdiv(n, tm_cap)
    if grid == 1 and n > 8:
        grid = 2          # keep the parallel axis splittable across v7x's 2 TCs
    tm = _round_up(_cdiv(n, grid), 8)
    return tm, grid, grid * tm


def _const_spec(shape):
    """Constant-block spec; single-buffered when pipeline_mode is supported."""
    index_map = lambda i: (0,) * len(shape)
    try:
        return pl.BlockSpec(shape, index_map, pipeline_mode=pl.Buffered(1))
    except (TypeError, AttributeError):
        return pl.BlockSpec(shape, index_map)


def encoder_forward(x, y, z, f, prep, *, tile_m=512):
    """x: (N, D) node features.  `prep` comes from prepare_params().
    Returns (out, y, z, f)."""
    N, D = x.shape
    Dp = prep["dp"]
    assert D == prep["d"], "feature dim mismatch with prepared parameters"

    tm, grid, N_pad = _row_tiling(N, Dp, x.dtype.itemsize, tile_m)

    # Only copy/pad x when actually required (D not lane-dense or ragged N).
    needs_pad = (N_pad != N) or (Dp != D)
    if needs_pad:
        x_p = jnp.zeros((N_pad, Dp), x.dtype).at[:N, :D].set(x)
    else:
        x_p = x

    kernel = functools.partial(encoder_kernel, d_valid=D)

    out_p = pl.pallas_call(
        kernel,
        out_shape=jax.ShapeDtypeStruct((N_pad, Dp), x.dtype),
        grid_spec=pltpu.PrefetchScalarGridSpec(
            num_scalar_prefetch=0,
            grid=(grid,),
            in_specs=[
                pl.BlockSpec((tm, Dp), lambda i: (i, 0)),   # x row tile
                _const_spec((Dp, Dp)),                      # W1^T  (bf16, constant)
                _const_spec((Dp, Dp)),                      # W2^T  (bf16, constant)
                _const_spec((4, Dp)),                       # [b1; b2; gamma; beta]
            ],
            out_specs=pl.BlockSpec((tm, Dp), lambda i: (i, 0)),
        ),
        compiler_params=pltpu.CompilerParams(
            dimension_semantics=("parallel",),
            vmem_limit_bytes=_VMEM_LIMIT_BYTES),
    )(x_p, prep["w1_t"], prep["w2_t"], prep["pvec"])

    out = out_p[:N, :D] if needs_pad else out_p
    return out, y, z, f


def init_params(key, encoder_dims):
    """Deterministic synthetic parameters (same shapes as the torch module)."""
    D = encoder_dims
    k1, k2, k3, k4 = jax.random.split(key, 4)
    scale = 1.0 / jnp.sqrt(D)
    return {
        "w1": jax.random.uniform(k1, (D, D), jnp.float32, -scale, scale),
        "b1": jax.random.uniform(k2, (D,), jnp.float32, -scale, scale),
        "w2": jax.random.uniform(k3, (D, D), jnp.float32, -scale, scale),
        "b2": jax.random.uniform(k4, (D,), jnp.float32, -scale, scale),
        "gamma": jnp.ones((D,), jnp.float32),
        "beta": jnp.zeros((D,), jnp.float32),
    }


def reference_forward(x, params):
    """Pure-JAX f32 reference for a correctness check."""
    h = jnp.maximum(x @ params["w1"].T + params["b1"], 0.0)
    o = h @ params["w2"].T + params["b2"]
    mean = o.mean(-1, keepdims=True)
    var = ((o - mean) ** 2).mean(-1, keepdims=True)
    ln = (o - mean) / jnp.sqrt(var + 1e-5) * params["gamma"] + params["beta"]
    return ln + x


if __name__ == "__main__":
    encoder_dims = 32     # must be divisible by n_heads=4
    n_nodes = 64          # synthetic "graph" node count
    n_edges = 96
    n_triplets = 48
    seq_len = 8

    key = jax.random.PRNGKey(0)
    kx, ky, kz, kf, kp = jax.random.split(key, 5)

    x = jax.random.normal(kx, (n_nodes, encoder_dims), jnp.float32)      # node feats
    y = jax.random.normal(ky, (n_edges, encoder_dims), jnp.float32)      # edge feats
    z = jax.random.normal(kz, (n_triplets, encoder_dims), jnp.float32)   # triplet feats
    f = jax.random.normal(kf, (seq_len, encoder_dims), jnp.float32)      # fragment feats

    params = init_params(kp, encoder_dims)
    prep = prepare_params(params)          # padding / bf16 cast done once

    out, y_out, z_out, f_out = encoder_forward(x, y, z, f, prep)
    out = jax.block_until_ready(out)

    ref = reference_forward(x, params)
    assert out.shape == x.shape
    # GEMMs run in bf16 (f32 accumulation); tolerance accounts for the bf16
    # mantissa vs. the pure-f32 reference.
    assert jnp.allclose(out, ref, atol=3e-2, rtol=3e-2), "mismatch vs reference"
    assert y_out.shape == y.shape and z_out.shape == z.shape and f_out.shape == f.shape

    print("KERNEL_OK")
</pallas_src>

<mosaic_0001>
module attributes {stable_mosaic.version = 11 : i64} {
  func.func @encoder_kernel(%arg0: i32, %arg1: memref<32x128xf32, #tpu.memory_space<vmem>>, %arg2: memref<128x128xbf16, #tpu.memory_space<vmem>>, %arg3: memref<128x128xbf16, #tpu.memory_space<vmem>>, %arg4: memref<4x128xf32, #tpu.memory_space<vmem>>, %arg5: memref<32x128xf32, #tpu.memory_space<vmem>>) attributes {dimension_semantics = [#tpu.dimension_semantics<parallel>], iteration_bounds = array<i64: 2>, scalar_prefetch = 0 : i64, scratch_operands = 0 : i64, tpu.core_type = #tpu.core_type<tc>, window_params = [{transform_indices = @transform_0, window_bounds = array<i64: 32, 128>}, {pipeline_mode = #tpu.pipeline_mode<synchronous>, transform_indices = @transform_1, window_bounds = array<i64: 128, 128>}, {pipeline_mode = #tpu.pipeline_mode<synchronous>, transform_indices = @transform_2, window_bounds = array<i64: 128, 128>}, {pipeline_mode = #tpu.pipeline_mode<synchronous>, transform_indices = @transform_3, window_bounds = array<i64: 4, 128>}, {transform_indices = @transform_4, window_bounds = array<i64: 32, 128>}]} {
    %c0 = arith.constant 0 : index
    %c0_0 = arith.constant 0 : index
    %0 = vector.load %arg1[%c0, %c0_0] : memref<32x128xf32, #tpu.memory_space<vmem>>, vector<32x128xf32>
    %c0_1 = arith.constant 0 : index
    %c0_2 = arith.constant 0 : index
    %1 = vector.load %arg4[%c0_1, %c0_2] : memref<4x128xf32, #tpu.memory_space<vmem>>, vector<1x128xf32>
    %c1 = arith.constant 1 : index
    %c0_3 = arith.constant 0 : index
    %2 = vector.load %arg4[%c1, %c0_3] : memref<4x128xf32, #tpu.memory_space<vmem>>, vector<1x128xf32>
    %c2 = arith.constant 2 : index
    %c0_4 = arith.constant 0 : index
    %3 = vector.load %arg4[%c2, %c0_4] : memref<4x128xf32, #tpu.memory_space<vmem>>, vector<1x128xf32>
    %c3 = arith.constant 3 : index
    %c0_5 = arith.constant 0 : index
    %4 = vector.load %arg4[%c3, %c0_5] : memref<4x128xf32, #tpu.memory_space<vmem>>, vector<1x128xf32>
    %5 = arith.truncf %0 : vector<32x128xf32> to vector<32x128xbf16>
    %c0_6 = arith.constant 0 : index
    %c0_7 = arith.constant 0 : index
    %6 = vector.load %arg2[%c0_6, %c0_7] : memref<128x128xbf16, #tpu.memory_space<vmem>>, vector<128x128xbf16>
    %cst = arith.constant dense<0.000000e+00> : vector<32x128xf32>
    %7 = tpu.matmul %5, %6, %cst {dimension_numbers = #tpu.dot_dimension_numbers<[1], [0], [0], [1], [0, 0, 1, 1], [], []>} : vector<32x128xbf16>, vector<128x128xbf16>, vector<32x128xf32> -> vector<32x128xf32>
    %8 = vector.broadcast %1 : vector<1x128xf32> to vector<32x128xf32>
    %9 = arith.addf %7, %8 : vector<32x128xf32>
    %cst_8 = arith.constant 0.000000e+00 : f32
    %10 = vector.broadcast %cst_8 : f32 to vector<32x128xf32>
    %11 = arith.maximumf %9, %10 : vector<32x128xf32>
    %12 = arith.truncf %11 : vector<32x128xf32> to vector<32x128xbf16>
    %c0_9 = arith.constant 0 : index
    %c0_10 = arith.constant 0 : index
    %13 = vector.load %arg3[%c0_9, %c0_10] : memref<128x128xbf16, #tpu.memory_space<vmem>>, vector<128x128xbf16>
    %cst_11 = arith.constant dense<0.000000e+00> : vector<32x128xf32>
    %14 = tpu.matmul %12, %13, %cst_11 {dimension_numbers = #tpu.dot_dimension_numbers<[1], [0], [0], [1], [0, 0, 1, 1], [], []>} : vector<32x128xbf16>, vector<128x128xbf16>, vector<32x128xf32> -> vector<32x128xf32>
    %15 = vector.broadcast %2 : vector<1x128xf32> to vector<32x128xf32>
    %16 = arith.addf %14, %15 : vector<32x128xf32>
    %cst_12 = arith.constant dense<0.000000e+00> : vector<32xf32>
    %17 = vector.multi_reduction <add>, %16, %cst_12 [1] : vector<32x128xf32> to vector<32xf32>
    %18 = vector.shape_cast %17 : vector<32xf32> to vector<32x1xf32>
    %cst_13 = arith.constant 3.125000e-02 : f32
    %19 = vector.broadcast %cst_13 : f32 to vector<32x1xf32>
    %20 = arith.mulf %18, %19 : vector<32x1xf32>
    %21 = tpu.iota {dimensions = array<i32: 1>} : vector<32x128xi32>
    %c32_i32 = arith.constant 32 : i32
    %22 = vector.broadcast %c32_i32 : i32 to vector<32x128xi32>
    %23 = arith.cmpi slt, %21, %22 : vector<32x128xi32>
    %24 = vector.broadcast %20 : vector<32x1xf32> to vector<32x128xf32>
    %25 = arith.subf %16, %24 : vector<32x128xf32>
    %cst_14 = arith.constant 0.000000e+00 : f32
    %26 = vector.broadcast %cst_14 : f32 to vector<32x128xf32>
    %27 = arith.select %23, %25, %26 : vector<32x128xi1>, vector<32x128xf32>
    %28 = arith.mulf %27, %27 : vector<32x128xf32>
    %cst_15 = arith.constant dense<0.000000e+00> : vector<32xf32>
    %29 = vector.multi_reduction <add>, %28, %cst_15 [1] : vector<32x128xf32> to vector<32xf32>
    %30 = vector.shape_cast %29 : vector<32xf32> to vector<32x1xf32>
    %cst_16 = arith.constant 3.125000e-02 : f32
    %31 = vector.broadcast %cst_16 : f32 to vector<32x1xf32>
    %32 = arith.mulf %30, %31 : vector<32x1xf32>
    %cst_17 = arith.constant 9.99999974E-6 : f32
    %33 = vector.broadcast %cst_17 : f32 to vector<32x1xf32>
    %34 = arith.addf %32, %33 : vector<32x1xf32>
    %35 = math.rsqrt %34 : vector<32x1xf32>
    %36 = vector.broadcast %35 : vector<32x1xf32> to vector<32x128xf32>
    %37 = arith.mulf %27, %36 : vector<32x128xf32>
    %38 = vector.broadcast %3 : vector<1x128xf32> to vector<32x128xf32>
    %39 = arith.mulf %37, %38 : vector<32x128xf32>
    %40 = vector.broadcast %4 : vector<1x128xf32> to vector<32x128xf32>
    %41 = arith.addf %39, %40 : vector<32x128xf32>
    %42 = arith.addf %41, %0 : vector<32x128xf32>
    %c0_18 = arith.constant 0 : index
    %c0_19 = arith.constant 0 : index
    %43 = vector.load %arg5[%c0_18, %c0_19] : memref<32x128xf32, #tpu.memory_space<vmem>>, vector<32x128xf32>
    tpu.vector_store %arg5[%c0_18, %c0_19], %42 {strides = array<i32>} : memref<32x128xf32, #tpu.memory_space<vmem>>, vector<32x128xf32>,
    return
  }
  func.func @transform_0(%arg0: i32) -> (i32, i32) {
    %c0_i32 = arith.constant 0 : i32
    %c0_i32_0 = arith.constant 0 : i32
    return %arg0, %c0_i32 : i32, i32
  }
  func.func @transform_1(%arg0: i32) -> (i32, i32) {
    %c0_i32 = arith.constant 0 : i32
    %c0_i32_0 = arith.constant 0 : i32
    %c0_i32_1 = arith.constant 0 : i32
    return %c0_i32, %c0_i32_0 : i32, i32
  }
  func.func @transform_2(%arg0: i32) -> (i32, i32) {
    %c0_i32 = arith.constant 0 : i32
    %c0_i32_0 = arith.constant 0 : i32
    %c0_i32_1 = arith.constant 0 : i32
    return %c0_i32, %c0_i32_0 : i32, i32
  }
  func.func @transform_3(%arg0: i32) -> (i32, i32) {
    %c0_i32 = arith.constant 0 : i32
    %c0_i32_0 = arith.constant 0 : i32
    %c0_i32_1 = arith.constant 0 : i32
    return %c0_i32, %c0_i32_0 : i32, i32
  }
  func.func @transform_4(%arg0: i32) -> (i32, i32) {
    %c0_i32 = arith.constant 0 : i32
    %c0_i32_0 = arith.constant 0 : i32
    return %arg0, %c0_i32 : i32, i32
  }
}

</mosaic_0001>

<bundles_post_ra>
// kernel: tpu_custom_call.1
= control target key start
LH: loop header
LB: loop body
LE: loop exit
PB: predicated region body
PF: predicated region fallthrough
CT: control target
= control target key end

     0   :  { %9 = vsyncpa [#allocation3], 0  ;;  %s1330_s0 = inlined_call_operand.hbm [shape: f32[64,128], index: 0, kind: input, shape index: {}]   ;;  %s1331_s1 = inlined_call_operand.hbm [shape: bf16[128,128], index: 1, kind: input, shape index: {}]   ;;  %s1332_s2 = inlined_call_operand.hbm [shape: bf16[128,128], index: 2, kind: input, shape index: {}]   ;;  %s1333_s3 = inlined_call_operand.hbm [shape: f32[4,128], index: 3, kind: input, shape index: {}]   ;;  %s1334_s4 = inlined_call_operand.hbm [shape: f32[64,128], index: 4, kind: output, shape index: {}]  }
   0x1   :  { %11 = vsyncpa [#allocation3 + $0x1], 0 }
   0x2   :  { %12 = vsyncpa [#allocation6], 0 }
   0x3   :  { %13 = vsyncpa [#allocation9], 0 }
   0x4   :  { %14 = vsyncpa [#allocation4], 0 }
   0x5   :  { %16 = vsyncpa [#allocation4 + $0x1], 0  ;;  %s1118_s15 = smov 0   ;;  %s1120_s16 = smov 0  }
   0x6   :  { %s1122_s17 = smov 0   ;;  %s1124_s18 = smov 0  }
   0x7 LB: > { %s1139_s19 = sadd.s32 4294967295, %s1082_s18   ;;  %s675_s20 = sadd.s32 4294967294, %s1082_s18   ;;  %s1082_s18 = sphi %s1124_s18, %s1345_s18   ;;  %s1078_s17 = sphi %s1122_s17, %s1344_s17   ;;  %s1074_s16 = sphi %s1120_s16, %s1343_s16   ;;  %s1070_s15 = sphi %s1118_s15, %s1342_s15  }
   0x8   : > { %p42_p0 = scmp.ne.s32.totalorder %s1074_s16, %s1070_s15  ;;  %p43_p1 = scmp.eq.s32.totalorder %s1139_s19, 0 }
   0x9   : > { %p129_p2 = scmp.eq.s32.totalorder %s1139_s19, 1  ;;  %p135_p3 = scmp.eq.s32.totalorder %s675_s20, 1 }
   0xa   : > { %p1148_p4 = por %p43_p1, %p42_p0  ;;  %p676_p5 = scmp.ge.s32.totalorder %s1082_s18, 1 }
   0xb   : > { %p1153_p6 = por %p135_p3, %p42_p0  ;;  %p142_p7 = scmp.lt.s32.totalorder %s1082_s18, 3 }
   0xc   : > { %s153_s25 = sshll.u32 %s1331_s1, 4  ;;  %s1084_s27 = smov [#allocation5]   ;;  %s154_s25 = int_to_ptr.hbm [resolvable:$true] %s153_s25 }
   0xd   : > { %p1161_p8 = pnand %p676_p5, %p142_p7  ;;  %s155_s28 = sshll.u32 %s1084_s27, 4  ;;  %s156_s28 = int_to_ptr.vmem [resolvable:$true] %s155_s28 }
   0xe   : > { %s167_s6 = sshll.u32 %s1332_s2, 4  ;;  %s1085_s7 = smov 64   ;;  %s168_s6 = int_to_ptr.hbm [resolvable:$true] %s167_s6 }
   0xf   : > { %p809_p9 = pneg %p1161_p8  ;;  %s1086_s8 = smov 4  }
  0x10   : > { %s1087_s9 = smov [#allocation7]   ;;  %s182_s13 = sshll.u32 %s1333_s3, 4  ;;  %s183_s13 = int_to_ptr.hbm [resolvable:$true] %s182_s13 }
  0x11   : > { %p1169_p10 = pnand %p809_p9, %p43_p1  ;;  %s169_s10 = sshll.u32 %s1087_s9, 4  ;;  %s170_s10 = int_to_ptr.vmem [resolvable:$true] %s169_s10 }
  0x12   : > { %s1088_s14 = smov [#allocation8]   ;;  %s1185_s23 = sadd.s32 1, %s1082_s18  }
  0x13   : > { %812 = dma.hbm_to_vmem [thread:$0]  (!%p1169_p10), %s154_s25, 1024, %s156_s28, [#allocation6], %s1085_s7, %s1085_s7, %s1086_s8  }
  0x14   : > { %815 = dma.hbm_to_vmem [thread:$0]  (!%p1169_p10), %s168_s6, 1024, %s170_s10, [#allocation6], %s1085_s7, %s1085_s7, %s1086_s8  }
  0x15   : > { %s184_s20 = sshll.u32 %s1088_s14, 4  ;;  %s26_s24 = ssub.s32 %s1082_s18, %s1185_s23  ;;  %s185_s20 = int_to_ptr.vmem [resolvable:$true] %s184_s20 }
  0x16   : > { %818 = dma.hbm_to_vmem [thread:$0]  (!%p1169_p10), %s183_s13, 64, %s185_s20, [#allocation9]  }
  0x17   : > { %s29_s25 = sadd.s32 1, %s1078_s17  ;;  %p27_p12 = scmp.eq.s32.totalorder %s26_s24, 0 }
  0x18   : > { %p36_p13 = scmp.ne.s32.totalorder %s1078_s17, %s1074_s16  ;;  %p37_p0 = scmp.eq.s32.totalorder %s1082_s18, 0 }
  0x19   : > { %p830_p3 = scmp.lt.s32.totalorder %s1082_s18, 2  ;;  %s195_s30 = sand.u32 1, %s1078_s17  }
  0x1a   : > { %s1197_s27 = scalar_select %p27_p12, %s1078_s17, %s29_s25  }
  0x1b   : > { %p38_p5 = por %p37_p0, %p36_p13  ;;  %p1201_p7 = por %p129_p2, %p36_p13 }
  0x1c   : > { %s759_s5 = sshll.u32 %s1082_s18, 5  ;;  %s681_s29 = sshll.u32 %s195_s30, 5 }
  0x1d   : > { %s204_s8 = scalar_lea.hbm %s1330_s0, %s759_s5  ;;  %s199_s10 = scalar_lea.vmem [#allocation2], %s681_s29 }
  0x1e   : > { %s205_s9 = sshll.u32 %s204_s8, 4  ;;  %s207_s11 = sshll.u32 %s199_s10, 4  ;;  %s206_s9 = int_to_ptr.hbm [resolvable:$true] %s205_s9  ;;  %s208_s11 = int_to_ptr.vmem [resolvable:$true] %s207_s11 }
  0x1f   : > { %p1212_p9 = pnand %p830_p3, %p38_p5  ;;  %s196_s13 = scalar_lea.sflag [#allocation3], %s195_s30 }
  0x20   : > { %s978_s14 = sshra.s32 %s206_s9, 4  ;;  %s985_s5 = scalar_lea.hbm %s1330_s0, 64  ;;  %s979_s14 = int_to_ptr.hbm [resolvable:$true] %s978_s14 }
  0x21   : > { %s980_s20 = scalar_lea.hbm %s979_s14, 32  ;;  %p982_p10 = pneg %p1212_p9 }
  0x22   : > { %p981_p2 = scmp.ne.s32.totalorder %s979_s14, %s980_s20  ;;  %p986_p0 = scmp.lt.s32.totalorder %s979_s14, %s1330_s0 }
  0x23   : > { %p987_p3 = scmp.lt.s32.totalorder %s985_s5, %s980_s20 }
  0x24   : > { %p983_p12 = pnand %p982_p10, %p981_p2 }
  0x25   : > { %p988_p5 = por %p987_p3, %p986_p0 }
  0x26   : > { %p984_p13 = pneg %p983_p12 }
  0x28   : > { %p989_p11 = pnand %p988_p5, %p984_p13 }
  0x2a   : > { %992 = shalt.err (!%p989_p11)
}
  0x2b   : > { %s1089_s30 = smov 128   ;;  %s1090_s7 = smov 8  }
  0x2c   : > { %822 = dma.hbm_to_vmem [thread:$0]  (!%p1212_p9), %s206_s9, 512, %s208_s11, %s196_s13, %s1089_s30, %s1089_s30, %s1090_s7  }
  0x2d   : > { %219 = sbr.rel (%p1161_p8) target bundleno = 648 (0x288), region = 36  ;;  %s1229_s8 = sand.u32 (!%p1161_p8), 1, %s1074_s16  }
  0x2e   : > { %s685_s10 = sshll.u32 (!%p1161_p8), %s1229_s8, 5  ;;  %s222_s14 = scalar_lea.sflag (!%p1161_p8), [#allocation3], %s1229_s8 }
  0x2f   : > { %s1235_s20 = scalar_lea.vmem (!%p1161_p8), [#allocation2], %s685_s10 }
  0x32   : > { %1053 = dma.done.wait (%p1148_p4), %s222_s14, 512  }
  0x33   : > { %1055 = vsyncadd (%p1148_p4), %s222_s14, 4294966784 }
  0x34   : > { %1057 = dma.done.wait (%p43_p1), [#allocation6], 2048  }
  0x35   : > { %1059 = vsyncadd (%p43_p1), [#allocation6], 4294965248 }
  0x36   : > { %1061 = dma.done.wait (%p43_p1), [#allocation9], 64  }
  0x37   : > { %1063 = vsyncadd (%p43_p1), [#allocation9], 4294967232  ;;  %v767_v0 = vld [vmem:[#allocation5 + $0x38] sm:$0xff]  ;;  %v766_v1 = vld [vmem:[#allocation5 + $0x30] sm:$0xff]  ;;  %v464_v46 = vlaneseq  ;;  %s1284_s21 = scalar_lea.vmem [#allocation10], %s685_s10  ;;  %s776_s26 = sshll.u32 %s1139_s19, 5 }
  0x38   : > { %343 = vmatpush.bf16.msra.mxu0 %v767_v0  ;;  %777 = vmatpush.bf16.msra.mxu2 %v767_v0  ;;  %v775_v2 = vld [vmem:[#allocation7 + $0x38] sm:$0xff]  ;;  %v765_v3 = vld [vmem:[#allocation5 + $0x28] sm:$0xff]  ;;  %v774_v4 = vld [vmem:[#allocation7 + $0x30] sm:$0xff]  ;;  %s569_s12 = scalar_lea.hbm %s1334_s4, %s776_s26  ;;  %s570_s13 = sshll.u32 %s1284_s21, 4  ;;  %s571_s13 = int_to_ptr.vmem [resolvable:$true] %s570_s13 }
  0x39   : > { %433 = vmatpush.bf16.msra.mxu1 %v775_v2  ;;  %785 = vmatpush.bf16.msra.mxu3 %v775_v2  ;;  %v764_v5 = vld [vmem:[#allocation5 + $0x20] sm:$0xff]  ;;  %v773_v6 = vld [vmem:[#allocation7 + $0x28] sm:$0xff]  ;;  %v763_v7 = vld [vmem:[#allocation5 + $0x18] sm:$0xff]  ;;  %v465_v47 = vand.u32 127, %v464_v46  ;;  %s572_s24 = sshll.u32 %s569_s12, 4  ;;  %s558_s19 = scalar_lea.sflag [#allocation4], %s1229_s8  ;;  %s573_s24 = int_to_ptr.hbm [resolvable:$true] %s572_s24 }
  0x3a   : > { %v772_v8 = vld [vmem:[#allocation7 + $0x20] sm:$0xff]  ;;  %v762_v9 = vld [vmem:[#allocation5 + $0x10] sm:$0xff]  ;;  %v761_v10 = vld [vmem:[#allocation5 + $0x8] sm:$0xff]  ;;  %s1022_s25 = sshra.s32 %s573_s24, 4  ;;  %s1028_s30 = scalar_lea.hbm %s1334_s4, 64  ;;  %s1023_s25 = int_to_ptr.hbm [resolvable:$true] %s1022_s25 }
  0x3b   : > { %v760_v11 = vld [vmem:[#allocation5] sm:$0xff]  ;;  %v1253_v13 = vld [vmem:[%s1235_s20 + $0x8] sm:$0xff]  ;;  %v1256_v14 = vld [vmem:[%s1235_s20 + $0x10] sm:$0xff]  ;;  %vm466_vm0 = vcmp.lt.s32.totalorder %v465_v47, 32  ;;  %s1024_s5 = scalar_lea.hbm %s1023_s25, 32  ;;  %p1029_p11 = scmp.lt.s32.totalorder %s1023_s25, %s1334_s4 }
  0x3c   : > { %344 = vmatpush.bf16.msra.mxu0 %v766_v1  ;;  %778 = vmatpush.bf16.msra.mxu2 %v766_v1  ;;  %v1250_v12 = vld [vmem:[%s1235_s20] sm:$0xff]  ;;  %v1259_v15 = vld [vmem:[%s1235_s20 + $0x18] sm:$0xff]  ;;  %v770_v19 = vld [vmem:[#allocation7 + $0x10] sm:$0xff]  ;;  %p1025_p1 = scmp.ne.s32.totalorder %s1023_s25, %s1024_s5  ;;  %p1030_p9 = scmp.lt.s32.totalorder %s1028_s30, %s1024_s5 }
  0x3d   : > { %434 = vmatpush.bf16.msra.mxu1 %v774_v4  ;;  %786 = vmatpush.bf16.msra.mxu3 %v774_v4  ;;  %v276_v16 = vpack.c.bf16 %v1253_v13, %v1250_v12  ;;  %v277_v17 = vpack.c.bf16 %v1259_v15, %v1256_v14  ;;  %v771_v18 = vld [vmem:[#allocation7 + $0x18] sm:$0xff]  ;;  %v769_v20 = vld [vmem:[#allocation7 + $0x8] sm:$0xff]  ;;  %v768_v21 = vld [vmem:[#allocation7] sm:$0xff] }
  0x3e   : > { %v876_v23 = vld [vmem:[#allocation8] ss:$0 sm:$0xff]  ;;  %v877_v37 = vld [vmem:[#allocation8 + $0x1] ss:$0 sm:$0xff]  ;;  %p1026_p4 = pnand %p1025_p1, %p1201_p7  ;;  %p1031_p2 = por %p1030_p9, %p1029_p11 }
  0x40   : > { %345 = vmatpush.bf16.msra.mxu0 %v765_v3  ;;  %779 = vmatpush.bf16.msra.mxu2 %v765_v3  ;;  %p1027_p8 = pneg %p1026_p4 }
  0x41   : > { %435 = vmatpush.bf16.msra.mxu1 %v773_v6  ;;  %787 = vmatpush.bf16.msra.mxu3 %v773_v6 }
  0x42   : > { %p1032_p10 = pnand %p1031_p2, %p1027_p8 }
  0x44   : > { %346 = vmatpush.bf16.msra.mxu0 %v764_v5  ;;  %780 = vmatpush.bf16.msra.mxu2 %v764_v5 }
  0x45   : > { %436 = vmatpush.bf16.msra.mxu1 %v772_v8  ;;  %788 = vmatpush.bf16.msra.mxu3 %v772_v8 }
  0x48   : > { %347 = vmatpush.bf16.msra.mxu0 %v763_v7  ;;  %781 = vmatpush.bf16.msra.mxu2 %v763_v7 }
  0x49   : > { %437 = vmatpush.bf16.msra.mxu1 %v771_v18  ;;  %789 = vmatpush.bf16.msra.mxu3 %v771_v18 }
  0x4c   : > { %348 = vmatpush.bf16.msra.mxu0 %v762_v9  ;;  %782 = vmatpush.bf16.msra.mxu2 %v762_v9 }
  0x4d   : > { %438 = vmatpush.bf16.msra.mxu1 %v770_v19  ;;  %790 = vmatpush.bf16.msra.mxu3 %v770_v19 }
  0x50   : > { %349 = vmatpush.bf16.msra.mxu0 %v761_v10  ;;  %783 = vmatpush.bf16.msra.mxu2 %v761_v10 }
  0x51   : > { %439 = vmatpush.bf16.msra.mxu1 %v769_v20  ;;  %791 = vmatpush.bf16.msra.mxu3 %v769_v20 }
  0x54   : > { %350 = vmatpush.bf16.msra.mxu0 %v760_v11  ;;  %784 = vmatpush.bf16.msra.mxu2 %v760_v11 }
  0x55   : > { %440 = vmatpush.bf16.msra.mxu1 %v768_v21  ;;  %792 = vmatpush.bf16.msra.mxu3 %v768_v21 }
  0x57   : > { %351 = vmatmul.bf16.vlgmr.msra.gmra.mxu0 %v276_v16  ;;  %356 = vmatmul.bf16.vlgmr.msra.gmra.mxu2 %v277_v17 }
  0xd4   : > { %v352_v22 = vpop.f32.mrf.mxu0 }
  0xd5   : > { %v353_v24 = vadd.f32 %v876_v23, %v352_v22 }
  0xd7   : > { %v362_v27 = vmax.f32 %v353_v24, 0.0 }
  0xda   : > { %v357_v25 = vpop.f32.mrf.mxu2 }
  0xdb   : > { %v358_v30 = vadd.f32 %v876_v23, %v357_v25 }
  0xdc   : > { %v354_v26 = vpop.f32.mrf.mxu0 }
  0xdd   : > { %v355_v28 = vadd.f32 %v876_v23, %v354_v26  ;;  %v364_v34 = vmax.f32 %v358_v30, 0.0  ;;  %v878_v26 = vld [vmem:[#allocation8 + $0x2] ss:$0 sm:$0xff] }
  0xdf   : > { %v363_v29 = vmax.f32 %v355_v28, 0.0 }
  0xe1   : > { %v366_v31 = vpack.c.bf16 %v363_v29, %v362_v27 }
  0xe2   : > { %v359_v32 = vpop.f32.mrf.mxu2 }
  0xe3   : > { %v360_v33 = vadd.f32 %v876_v23, %v359_v32  ;;  %441 = vmatmul.bf16.vlgmr.msra.gmra.mxu1 %v366_v31  ;;  %v879_v31 = vld [vmem:[#allocation8 + $0x3] ss:$0 sm:$0xff] }
  0xe5   : > { %v365_v35 = vmax.f32 %v360_v33, 0.0 }
  0xe7   : > { %v367_v36 = vpack.c.bf16 %v365_v35, %v364_v34 }
  0xe9   : > { %446 = vmatmul.bf16.vlgmr.msra.gmra.mxu3 %v367_v36 }
 0x160   : > { %v442_v38 = vpop.f32.mrf.mxu1 }
 0x161   : > { %v443_v39 = vadd.f32 %v877_v37, %v442_v38 }
 0x163   : > { %452 = vadd.xlane.f32.xlu0 %v443_v39 }
 0x168   : > { %v444_v40 = vpop.f32.mrf.mxu1 }
 0x169   : > { %v445_v41 = vadd.f32 %v877_v37, %v444_v40 }
 0x16b   : > { %454 = vadd.xlane.f32.xlu0 %v445_v41 }
 0x16c   : > { %v447_v42 = vpop.f32.mrf.mxu3 }
 0x16d   : > { %v448_v43 = vadd.f32 %v877_v37, %v447_v42 }
 0x16f   : > { %456 = vadd.xlane.f32.xlu1 %v448_v43 }
 0x174   : > { %v449_v44 = vpop.f32.mrf.mxu3 }
 0x175   : > { %v450_v45 = vadd.f32 %v877_v37, %v449_v44 }
 0x177   : > { %458 = vadd.xlane.f32.xlu1 %v450_v45 }
 0x1d6   : > { %v453_v48 = vpop.xlane.xlu0 %452 }
 0x1d7   : > { %v460_v49 = vmul.f32 0.03125, %v453_v48 }
 0x1d9   : > { %v467_v50 = vsub.f32 %v443_v39, %v460_v49 }
 0x1db   : > { %v471_v51 = vsel %vm466_vm0, %v467_v50, 0.0 }
 0x1dc   : > { %v475_v52 = vmul.f32 %v471_v51, %v471_v51 }
 0x1de   : > { %479 = vadd.xlane.f32.xlu2 %v475_v52  ;;  %v455_v53 = vpop.xlane.xlu0 %454 }
 0x1df   : > { %v461_v54 = vmul.f32 0.03125, %v455_v53 }
 0x1e1   : > { %v468_v55 = vsub.f32 %v445_v41, %v461_v54 }
 0x1e2   : > { %v457_v56 = vpop.xlane.xlu1 %456 }
 0x1e3   : > { %v462_v57 = vmul.f32 0.03125, %v457_v56  ;;  %v1267_v58 = vsel %vm466_vm0, %v468_v55, 0.0 }
 0x1e4   : > { %v476_v59 = vmul.f32 %v1267_v58, %v1267_v58 }
 0x1e5   : > { %v469_v60 = vsub.f32 %v448_v43, %v462_v57 }
 0x1e6   : > { %481 = vadd.xlane.f32.xlu2 %v476_v59 }
 0x1e7   : > { %v1272_v61 = vsel %vm466_vm0, %v469_v60, 0.0 }
 0x1e8   : > { %v477_v62 = vmul.f32 %v1272_v61, %v1272_v61 }
 0x1ea   : > { %v459_v63 = vpop.xlane.xlu1 %458  ;;  %483 = vadd.xlane.f32.xlu0 %v477_v62 }
 0x1eb   : > { %v463_v0 = vmul.f32 0.03125, %v459_v63 }
 0x1ed   : > { %v470_v1 = vsub.f32 %v450_v45, %v463_v0 }
 0x1ef   : > { %v1277_v2 = vsel %vm466_vm0, %v470_v1, 0.0 }
 0x1f0   : > { %v478_v3 = vmul.f32 %v1277_v2, %v1277_v2 }
 0x1f2   : > { %485 = vadd.xlane.f32.xlu1 %v478_v3 }
 0x251   : > { %v480_v4 = vpop.xlane.xlu2 %479 }
 0x252   : > { %v487_v5 = vmul.f32 0.03125, %v480_v4 }
 0x254   : > { %v491_v6 = vadd.f32 1e-05, %v487_v5 }
 0x256   : > { %880 = vrsqrt.f32 %v491_v6  ;;  %vm501_vm2 = vweird.f32 %v491_v6 }
 0x259   : > { %v482_v7 = vpop.xlane.xlu2 %481 }
 0x25a   : > { %v488_v8 = vmul.f32 0.03125, %v482_v7 }
 0x25c   : > { %v881_v9 = vpop.eup %880  ;;  %v492_v10 = vadd.f32 1e-05, %v488_v8 }
 0x25d   : > { %v496_v11 = vmul.f32 %v881_v9, %v491_v6  ;;  %v484_v16 = vpop.xlane.xlu0 %483  ;;  %vm502_vm1 = vweird.f32 %v881_v9 }
 0x25e   : > { %882 = vrsqrt.f32 %v492_v10  ;;  %v489_v17 = vmul.f32 0.03125, %v484_v16  ;;  %vm503_vm3 = vmor %vm501_vm2, %vm502_vm1  ;;  %vm511_vm5 = vweird.f32 %v492_v10 }
 0x25f   : > { %v497_v18 = vmul.f32 %v881_v9, %v496_v11 }
 0x260   : > { %v493_v19 = vadd.f32 1e-05, %v489_v17 }
 0x261   : > { %v498_v20 = vmul.f32 0.5, %v497_v18 }
 0x262   : > { %884 = vrsqrt.f32 %v493_v19  ;;  %vm521_vm8 = vweird.f32 %v493_v19 }
 0x263   : > { %v499_v21 = vsub.f32 1.5, %v498_v20 }
 0x264   : > { %v883_v22 = vpop.eup %882 }
 0x265   : > { %v500_v23 = vmul.f32 %v881_v9, %v499_v21  ;;  %v506_v24 = vmul.f32 %v883_v22, %v492_v10  ;;  %v486_v25 = vpop.xlane.xlu1 %485  ;;  %vm512_vm4 = vweird.f32 %v883_v22 }
 0x266   : > { %v490_v27 = vmul.f32 0.03125, %v486_v25  ;;  %vm513_vm6 = vmor %vm511_vm5, %vm512_vm4 }
 0x267   : > { %v504_v28 = vsel %vm503_vm3, %v881_v9, %v500_v23  ;;  %v507_v29 = vmul.f32 %v883_v22, %v506_v24 }
 0x268   : > { %v885_v30 = vpop.eup %884  ;;  %v535_v32 = vmul.f32 %v504_v28, %v471_v51  ;;  %v494_v33 = vadd.f32 1e-05, %v490_v27 }
 0x269   : > { %v508_v34 = vmul.f32 0.5, %v507_v29  ;;  %v516_v35 = vmul.f32 %v885_v30, %v493_v19  ;;  %vm522_vm7 = vweird.f32 %v885_v30 }
 0x26a   : > { %v540_v36 = vmul.f32 %v878_v26, %v535_v32  ;;  %886 = vrsqrt.f32 %v494_v33  ;;  %vm523_vm9 = vmor %vm521_vm8, %vm522_vm7  ;;  %vm531_vm11 = vweird.f32 %v494_v33 }
 0x26b   : > { %v509_v37 = vsub.f32 1.5, %v508_v34  ;;  %v517_v38 = vmul.f32 %v885_v30, %v516_v35 }
 0x26c   : > { %v545_v39 = vadd.f32 %v879_v31, %v540_v36 }
 0x26d   : > { %v510_v40 = vmul.f32 %v883_v22, %v509_v37  ;;  %v518_v41 = vmul.f32 0.5, %v517_v38 }
 0x26e   : > { %v549_v42 = vadd.f32 %v545_v39, %v1250_v12 }
 0x26f   : > { %v514_v43 = vsel %vm513_vm6, %v883_v22, %v510_v40  ;;  %v519_v44 = vsub.f32 1.5, %v518_v41 }
 0x270   : > { %v887_v45 = vpop.eup %886  ;;  %553 = vst [vmem:[%s1284_s21] sm:$0xff] %v549_v42  ;;  %v536_v46 = vmul.f32 %v514_v43, %v1267_v58 }
 0x271   : > { %v520_v47 = vmul.f32 %v885_v30, %v519_v44  ;;  %v526_v48 = vmul.f32 %v887_v45, %v494_v33  ;;  %vm532_vm10 = vweird.f32 %v887_v45 }
 0x272   : > { %v541_v49 = vmul.f32 %v878_v26, %v536_v46  ;;  %vm533_vm12 = vmor %vm531_vm11, %vm532_vm10 }
 0x273   : > { %v524_v12 = vsel %vm523_vm9, %v885_v30, %v520_v47  ;;  %v527_v50 = vmul.f32 %v887_v45, %v526_v48 }
 0x274   : > { %v546_v51 = vadd.f32 %v879_v31, %v541_v49  ;;  %v537_v52 = vmul.f32 %v524_v12, %v1272_v61 }
 0x275   : > { %v528_v53 = vmul.f32 0.5, %v527_v50 }
 0x276   : > { %v550_v54 = vadd.f32 %v546_v51, %v1253_v13  ;;  %v542_v55 = vmul.f32 %v878_v26, %v537_v52 }
 0x277   : > { %v529_v56 = vsub.f32 1.5, %v528_v53 }
 0x278   : > { %554 = vst [vmem:[%s1284_s21 + $0x8] sm:$0xff] %v550_v54  ;;  %v547_v57 = vadd.f32 %v879_v31, %v542_v55 }
 0x279   : > { %v530_v58 = vmul.f32 %v887_v45, %v529_v56 }
 0x27a   : > { %v551_v59 = vadd.f32 %v547_v57, %v1256_v14 }
 0x27b   : > { %v534_v60 = vsel %vm533_vm12, %v887_v45, %v530_v58 }
 0x27c   : > { %555 = vst [vmem:[%s1284_s21 + $0x10] sm:$0xff] %v551_v59  ;;  %v538_v13 = vmul.f32 %v534_v60, %v1277_v2 }
 0x27e   : > { %v543_v61 = vmul.f32 %v878_v26, %v538_v13 }
 0x280   : > { %v548_v62 = vadd.f32 %v879_v31, %v543_v61 }
 0x282   : > { %v552_v63 = vadd.f32 %v548_v62, %v1259_v15 }
 0x284   : > { %556 = vst [vmem:[%s1284_s21 + $0x18] sm:$0xff] %v552_v63 }
 0x285   : > { %1035 = shalt.err (!%p1032_p10)
}
 0x286   : > { %s1091_s8 = smov 128   ;;  %s1092_s14 = smov 8  }
 0x287   : > { %807 = dma.vmem_to_hbm [thread:$0]  (%p1201_p7), %s571_s13, 512, %s573_s24, %s558_s19, %s1091_s8, %s1091_s8, %s1092_s14  }
 0x288 PF: > { %s587_s20 = sand.u32 1, %s1070_s15   ;;  %p1341_p12 = scmp.ge.s32.totalorder %s1082_s18, 2 }
 0x289   : > { %s588_s21 = scalar_lea.sflag [#allocation4], %s587_s20 }
 0x28a   : > { %p824_p13 = pnand %p1341_p12, %p1153_p6 }
 0x28c   : > { %p825_p0 = pneg %p824_p13 }
 0x28e   : > { %1065 = dma.done.wait (%p825_p0), %s588_s21, 512  }
 0x28f   : > { %1067 = vsyncadd (%p825_p0), %s588_s21, 4294966784  ;;  %p19_p3 = scmp.ge.s32.totalorder %s1185_s23, 4   ;;  %s1342_s15 = smov %s1074_s16 }
 0x290   : > { %s1343_s16 = smov %s1078_s17  ;;  %s1344_s17 = smov %s1197_s27 }
 0x291   : > { %s1345_s18 = smov %s1185_s23  ;;  %21 = sbr.rel (!%p19_p3) target bundleno = 7 (0x7), region = 93 }
 0x296   :  { %594 = vsyncpa [#allocation3], 1 }
 0x297   :  { %596 = vsyncpa [#allocation3 + $0x1], 1 }
 0x298   :  { %597 = vsyncpa [#allocation6], 1 }
 0x299   :  { %598 = vsyncpa [#allocation9], 1 }
 0x29a   :  { %599 = vsyncpa [#allocation4], 1 }
 0x29b   :  { %601 = vsyncpa [#allocation4 + $0x1], 1 }

</bundles_post_ra>
